<compile_context>
chip_gen: v6e
topology: v6e:2x2x1
jax: 0.10.0
libtpu: 0.0.40
codegen_flags: <defaults>
</compile_context>

<pallas_src>
import jax
import jax.numpy as jnp
import numpy as np
from jax import lax
from jax.experimental import pallas as pl
from jax.experimental.pallas import tpu as pltpu


def residual_unit_pallas(x_nchw, params, *, use_bf16_matmul=False):
    (w1, b1, g1, be1, m1, v1, w2, b2, g2, be2, m2, v2) = params
    eps = 1e-5
    f32 = jnp.float32
    cdt = jnp.bfloat16 if use_bf16_matmul else f32      # matmul operand dtype

    N, C, H, W = x_nchw.shape
    Hp, Wp = H + 2, W + 2                  # zero-padded spatial (conv padding=1)
    Cp = ((C + 7) // 8) * 8                # channels -> sublane multiple of 8
    P = Hp * Wp                            # flattened padded pixels per image
    Lpad = ((P + 127) // 128) * 128        # lane-dense width (multiple of 128)

    # ---- activations: NCHW -> per-image channels-major lane slab (N, Cp, Lpad)
    # one pad handles channel + spatial halo zeros, one pad the lane tail.
    xp = jnp.pad(x_nchw.astype(f32), ((0, 0), (0, Cp - C), (1, 1), (1, 1)))
    xe = jnp.pad(xp.reshape(N, Cp, P),
                 ((0, 0), (0, 0), (0, Lpad - P))).astype(cdt)

    # ---- weights: (Cout, Cin, 3, 3) -> 9 per-tap matrices (9, Cp, Cp)
    def to_tap_w(w):
        wt = jnp.transpose(w.astype(f32), (2, 3, 0, 1)).reshape(9, C, C)
        return jnp.pad(wt, ((0, 0), (0, Cp - C), (0, Cp - C))).astype(cdt)

    # ---- fold conv bias + BN (eval mode) into per-channel scale / shift
    def fold(b, g, be, m, v):
        scale = (g / jnp.sqrt(v + eps)).astype(f32)
        shift = ((b - m) * scale + be).astype(f32)
        return (jnp.pad(scale, (0, Cp - C)).reshape(Cp, 1),
                jnp.pad(shift, (0, Cp - C)).reshape(Cp, 1))

    w1t, w2t = to_tap_w(w1), to_tap_w(w2)
    s1, t1 = fold(b1, g1, be1, m1, v1)
    s2, t2 = fold(b2, g2, be2, m2, v2)

    # interior mask: 1 at valid pixels, 0 at conv-padding positions / lane tail.
    m_sp = np.zeros((Hp, Wp), np.float32)
    m_sp[1:H + 1, 1:W + 1] = 1.0
    mask_np = np.zeros((1, Lpad), np.float32)
    mask_np[0, :P] = m_sp.reshape(-1)
    mask = jnp.asarray(mask_np)

    # flat lane offsets of the 9 conv taps (kh, kw) relative to the center.
    offs = tuple((kh - 1) * Wp + (kw - 1) for kh in range(3) for kw in range(3))

    def kernel(x_ref, w1_ref, w2_ref, s1_ref, t1_ref, s2_ref, t2_ref,
               mask_ref, out_ref):
        x = x_ref[...]                                        # (Cp, Lpad)

        def conv3x3(src, w_ref):
            # 9 accumulating MXU matmuls; taps via XLU lane rolls (no copies).
            acc = None
            for t, o in enumerate(offs):
                tap = src if o == 0 else pltpu.roll(src, (-o) % Lpad, 1)
                part = jnp.dot(w_ref[t], tap,
                               preferred_element_type=jnp.float32)
                acc = part if acc is None else acc + part
            return acc                                        # (Cp, Lpad) f32

        y1 = conv3x3(x, w1_ref)
        # folded bias+BN1, ReLU, then zero the padding / tail lanes so the
        # masked slab is exactly conv2's zero-padded input.
        h1 = jnp.maximum(y1 * s1_ref[...] + t1_ref[...], 0.0) * mask_ref[...]

        y2 = conv3x3(h1.astype(w2_ref.dtype), w2_ref)
        y2 = y2 * s2_ref[...] + t2_ref[...]

        # out = relu(out - identity); lane-dense, unmasked store.
        out_ref[...] = jnp.maximum(y2 - x.astype(jnp.float32), 0.0)

    out = pl.pallas_call(
        kernel,
        out_shape=jax.ShapeDtypeStruct((N, Cp, Lpad), f32),
        grid=(N,),
        in_specs=[
            pl.BlockSpec((None, Cp, Lpad), lambda n: (n, 0, 0)),  # activations
            pl.BlockSpec((9, Cp, Cp), lambda n: (0, 0, 0)),       # w1 taps (resident)
            pl.BlockSpec((9, Cp, Cp), lambda n: (0, 0, 0)),       # w2 taps (resident)
            pl.BlockSpec((Cp, 1), lambda n: (0, 0)),              # BN1 scale
            pl.BlockSpec((Cp, 1), lambda n: (0, 0)),              # BN1 shift
            pl.BlockSpec((Cp, 1), lambda n: (0, 0)),              # BN2 scale
            pl.BlockSpec((Cp, 1), lambda n: (0, 0)),              # BN2 shift
            pl.BlockSpec((1, Lpad), lambda n: (0, 0)),            # interior mask
        ],
        out_specs=pl.BlockSpec((None, Cp, Lpad), lambda n: (n, 0, 0)),
        compiler_params=pltpu.CompilerParams(
            dimension_semantics=("parallel",)),
    )(xe, w1t, w2t, s1, t1, s2, t2, mask)

    # back to NCHW: drop channel / lane-tail padding and the conv halo pixels.
    out = out[:, :C, :P].reshape(N, C, Hp, Wp)[:, :, 1:H + 1, 1:W + 1]
    return out.astype(x_nchw.dtype)


def residual_unit_ref(x_nchw, params):
    """Pure-JAX reference (NHWC conv via lax) for correctness checking."""
    (w1, b1, g1, be1, m1, v1, w2, b2, g2, be2, m2, v2) = params
    eps = 1e-5
    x = jnp.transpose(x_nchw, (0, 2, 3, 1)).astype(jnp.float32)

    def conv(z, w, b):
        w_hwio = jnp.transpose(w, (2, 3, 1, 0))      # (kh, kw, Cin, Cout)
        y = lax.conv_general_dilated(z, w_hwio, (1, 1), 'SAME',
                                     dimension_numbers=('NHWC', 'HWIO', 'NHWC'))
        return y + b

    def bn(z, g, be, m, v):
        return (z - m) / jnp.sqrt(v + eps) * g + be

    out = jax.nn.relu(bn(conv(x, w1, b1), g1, be1, m1, v1))
    out = bn(conv(out, w2, b2), g2, be2, m2, v2)
    out = jax.nn.relu(out - x)
    return jnp.transpose(out, (0, 3, 1, 2))


def make_params(key, C):
    ks = jax.random.split(key, 12)
    w1 = jax.random.normal(ks[0], (C, C, 3, 3), jnp.float32) * 0.1
    b1 = jax.random.normal(ks[1], (C,), jnp.float32) * 0.1
    g1 = 1.0 + 0.1 * jax.random.normal(ks[2], (C,), jnp.float32)
    be1 = 0.1 * jax.random.normal(ks[3], (C,), jnp.float32)
    m1 = 0.1 * jax.random.normal(ks[4], (C,), jnp.float32)
    v1 = 1.0 + 0.5 * jax.random.uniform(ks[5], (C,), jnp.float32)
    w2 = jax.random.normal(ks[6], (C, C, 3, 3), jnp.float32) * 0.1
    b2 = jax.random.normal(ks[7], (C,), jnp.float32) * 0.1
    g2 = 1.0 + 0.1 * jax.random.normal(ks[8], (C,), jnp.float32)
    be2 = 0.1 * jax.random.normal(ks[9], (C,), jnp.float32)
    m2 = 0.1 * jax.random.normal(ks[10], (C,), jnp.float32)
    v2 = 1.0 + 0.5 * jax.random.uniform(ks[11], (C,), jnp.float32)
    return (w1, b1, g1, be1, m1, v1, w2, b2, g2, be2, m2, v2)


if __name__ == "__main__":
    key = jax.random.PRNGKey(0)
    kx, kp = jax.random.split(key)
    N, C, H, W = 2, 4, 16, 16
    x = jax.random.normal(kx, (N, C, H, W), jnp.float32)
    params = make_params(kp, C)

    out = jax.block_until_ready(residual_unit_pallas(x, params))
    ref = jax.block_until_ready(residual_unit_ref(x, params))

    assert out.shape == (N, C, H, W)
    np.testing.assert_allclose(np.asarray(out), np.asarray(ref),
                               rtol=1e-4, atol=1e-4)
    print("KERNEL_OK")
</pallas_src>

<mosaic_0001>
module attributes {stable_mosaic.version = 11 : i64} {
  func.func @kernel(%arg0: i32, %arg1: memref<1x8x384xf32, #tpu.memory_space<vmem>>, %arg2: memref<9x8x8xf32, #tpu.memory_space<vmem>>, %arg3: memref<9x8x8xf32, #tpu.memory_space<vmem>>, %arg4: memref<8x1xf32, #tpu.memory_space<vmem>>, %arg5: memref<8x1xf32, #tpu.memory_space<vmem>>, %arg6: memref<8x1xf32, #tpu.memory_space<vmem>>, %arg7: memref<8x1xf32, #tpu.memory_space<vmem>>, %arg8: memref<1x384xf32, #tpu.memory_space<vmem>>, %arg9: memref<1x8x384xf32, #tpu.memory_space<vmem>>) attributes {dimension_semantics = [#tpu.dimension_semantics<parallel>], iteration_bounds = array<i64: 2>, scalar_prefetch = 0 : i64, scratch_operands = 0 : i64, tpu.core_type = #tpu.core_type<tc>, window_params = [{transform_indices = @transform_0, window_bounds = array<i64: 1, 8, 384>}, {pipeline_mode = #tpu.pipeline_mode<synchronous>, transform_indices = @transform_1, window_bounds = array<i64: 9, 8, 8>}, {pipeline_mode = #tpu.pipeline_mode<synchronous>, transform_indices = @transform_2, window_bounds = array<i64: 9, 8, 8>}, {pipeline_mode = #tpu.pipeline_mode<synchronous>, transform_indices = @transform_3, window_bounds = array<i64: 8, 1>}, {pipeline_mode = #tpu.pipeline_mode<synchronous>, transform_indices = @transform_4, window_bounds = array<i64: 8, 1>}, {pipeline_mode = #tpu.pipeline_mode<synchronous>, transform_indices = @transform_5, window_bounds = array<i64: 8, 1>}, {pipeline_mode = #tpu.pipeline_mode<synchronous>, transform_indices = @transform_6, window_bounds = array<i64: 8, 1>}, {pipeline_mode = #tpu.pipeline_mode<synchronous>, transform_indices = @transform_7, window_bounds = array<i64: 1, 384>}, {transform_indices = @transform_8, window_bounds = array<i64: 1, 8, 384>}]} {
    %c0 = arith.constant 0 : index
    %c0_0 = arith.constant 0 : index
    %c0_1 = arith.constant 0 : index
    %0 = vector.load %arg1[%c0, %c0_0, %c0_1] : memref<1x8x384xf32, #tpu.memory_space<vmem>>, vector<1x8x384xf32>
    %1 = vector.shape_cast %0 : vector<1x8x384xf32> to vector<8x384xf32>
    %c19_i32 = arith.constant 19 : i32
    %2 = tpu.dynamic_rotate %1 by %c19_i32 dim 1 : vector<8x384xf32>, i32 -> vector<8x384xf32>
    %c0_2 = arith.constant 0 : index
    %c0_3 = arith.constant 0 : index
    %c0_4 = arith.constant 0 : index
    %3 = vector.load %arg2[%c0_2, %c0_3, %c0_4] : memref<9x8x8xf32, #tpu.memory_space<vmem>>, vector<1x8x8xf32>
    %4 = vector.shape_cast %3 : vector<1x8x8xf32> to vector<8x8xf32>
    %cst = arith.constant dense<0.000000e+00> : vector<8x384xf32>
    %5 = tpu.matmul %4, %2, %cst {dimension_numbers = #tpu.dot_dimension_numbers<[1], [0], [0], [1], [0, 0, 1, 1], [], []>} : vector<8x8xf32>, vector<8x384xf32>, vector<8x384xf32> -> vector<8x384xf32>
    %c18_i32 = arith.constant 18 : i32
    %6 = tpu.dynamic_rotate %1 by %c18_i32 dim 1 : vector<8x384xf32>, i32 -> vector<8x384xf32>
    %c1 = arith.constant 1 : index
    %c0_5 = arith.constant 0 : index
    %c0_6 = arith.constant 0 : index
    %7 = vector.load %arg2[%c1, %c0_5, %c0_6] : memref<9x8x8xf32, #tpu.memory_space<vmem>>, vector<1x8x8xf32>
    %8 = vector.shape_cast %7 : vector<1x8x8xf32> to vector<8x8xf32>
    %cst_7 = arith.constant dense<0.000000e+00> : vector<8x384xf32>
    %9 = tpu.matmul %8, %6, %cst_7 {dimension_numbers = #tpu.dot_dimension_numbers<[1], [0], [0], [1], [0, 0, 1, 1], [], []>} : vector<8x8xf32>, vector<8x384xf32>, vector<8x384xf32> -> vector<8x384xf32>
    %10 = arith.addf %5, %9 : vector<8x384xf32>
    %c17_i32 = arith.constant 17 : i32
    %11 = tpu.dynamic_rotate %1 by %c17_i32 dim 1 : vector<8x384xf32>, i32 -> vector<8x384xf32>
    %c2 = arith.constant 2 : index
    %c0_8 = arith.constant 0 : index
    %c0_9 = arith.constant 0 : index
    %12 = vector.load %arg2[%c2, %c0_8, %c0_9] : memref<9x8x8xf32, #tpu.memory_space<vmem>>, vector<1x8x8xf32>
    %13 = vector.shape_cast %12 : vector<1x8x8xf32> to vector<8x8xf32>
    %cst_10 = arith.constant dense<0.000000e+00> : vector<8x384xf32>
    %14 = tpu.matmul %13, %11, %cst_10 {dimension_numbers = #tpu.dot_dimension_numbers<[1], [0], [0], [1], [0, 0, 1, 1], [], []>} : vector<8x8xf32>, vector<8x384xf32>, vector<8x384xf32> -> vector<8x384xf32>
    %15 = arith.addf %10, %14 : vector<8x384xf32>
    %c1_i32 = arith.constant 1 : i32
    %16 = tpu.dynamic_rotate %1 by %c1_i32 dim 1 : vector<8x384xf32>, i32 -> vector<8x384xf32>
    %c3 = arith.constant 3 : index
    %c0_11 = arith.constant 0 : index
    %c0_12 = arith.constant 0 : index
    %17 = vector.load %arg2[%c3, %c0_11, %c0_12] : memref<9x8x8xf32, #tpu.memory_space<vmem>>, vector<1x8x8xf32>
    %18 = vector.shape_cast %17 : vector<1x8x8xf32> to vector<8x8xf32>
    %cst_13 = arith.constant dense<0.000000e+00> : vector<8x384xf32>
    %19 = tpu.matmul %18, %16, %cst_13 {dimension_numbers = #tpu.dot_dimension_numbers<[1], [0], [0], [1], [0, 0, 1, 1], [], []>} : vector<8x8xf32>, vector<8x384xf32>, vector<8x384xf32> -> vector<8x384xf32>
    %20 = arith.addf %15, %19 : vector<8x384xf32>
    %c4 = arith.constant 4 : index
    %c0_14 = arith.constant 0 : index
    %c0_15 = arith.constant 0 : index
    %21 = vector.load %arg2[%c4, %c0_14, %c0_15] : memref<9x8x8xf32, #tpu.memory_space<vmem>>, vector<1x8x8xf32>
    %22 = vector.shape_cast %21 : vector<1x8x8xf32> to vector<8x8xf32>
    %cst_16 = arith.constant dense<0.000000e+00> : vector<8x384xf32>
    %23 = tpu.matmul %22, %1, %cst_16 {dimension_numbers = #tpu.dot_dimension_numbers<[1], [0], [0], [1], [0, 0, 1, 1], [], []>} : vector<8x8xf32>, vector<8x384xf32>, vector<8x384xf32> -> vector<8x384xf32>
    %24 = arith.addf %20, %23 : vector<8x384xf32>
    %c383_i32 = arith.constant 383 : i32
    %25 = tpu.dynamic_rotate %1 by %c383_i32 dim 1 : vector<8x384xf32>, i32 -> vector<8x384xf32>
    %c5 = arith.constant 5 : index
    %c0_17 = arith.constant 0 : index
    %c0_18 = arith.constant 0 : index
    %26 = vector.load %arg2[%c5, %c0_17, %c0_18] : memref<9x8x8xf32, #tpu.memory_space<vmem>>, vector<1x8x8xf32>
    %27 = vector.shape_cast %26 : vector<1x8x8xf32> to vector<8x8xf32>
    %cst_19 = arith.constant dense<0.000000e+00> : vector<8x384xf32>
    %28 = tpu.matmul %27, %25, %cst_19 {dimension_numbers = #tpu.dot_dimension_numbers<[1], [0], [0], [1], [0, 0, 1, 1], [], []>} : vector<8x8xf32>, vector<8x384xf32>, vector<8x384xf32> -> vector<8x384xf32>
    %29 = arith.addf %24, %28 : vector<8x384xf32>
    %c367_i32 = arith.constant 367 : i32
    %30 = tpu.dynamic_rotate %1 by %c367_i32 dim 1 : vector<8x384xf32>, i32 -> vector<8x384xf32>
    %c6 = arith.constant 6 : index
    %c0_20 = arith.constant 0 : index
    %c0_21 = arith.constant 0 : index
    %31 = vector.load %arg2[%c6, %c0_20, %c0_21] : memref<9x8x8xf32, #tpu.memory_space<vmem>>, vector<1x8x8xf32>
    %32 = vector.shape_cast %31 : vector<1x8x8xf32> to vector<8x8xf32>
    %cst_22 = arith.constant dense<0.000000e+00> : vector<8x384xf32>
    %33 = tpu.matmul %32, %30, %cst_22 {dimension_numbers = #tpu.dot_dimension_numbers<[1], [0], [0], [1], [0, 0, 1, 1], [], []>} : vector<8x8xf32>, vector<8x384xf32>, vector<8x384xf32> -> vector<8x384xf32>
    %34 = arith.addf %29, %33 : vector<8x384xf32>
    %c366_i32 = arith.constant 366 : i32
    %35 = tpu.dynamic_rotate %1 by %c366_i32 dim 1 : vector<8x384xf32>, i32 -> vector<8x384xf32>
    %c7 = arith.constant 7 : index
    %c0_23 = arith.constant 0 : index
    %c0_24 = arith.constant 0 : index
    %36 = vector.load %arg2[%c7, %c0_23, %c0_24] : memref<9x8x8xf32, #tpu.memory_space<vmem>>, vector<1x8x8xf32>
    %37 = vector.shape_cast %36 : vector<1x8x8xf32> to vector<8x8xf32>
    %cst_25 = arith.constant dense<0.000000e+00> : vector<8x384xf32>
    %38 = tpu.matmul %37, %35, %cst_25 {dimension_numbers = #tpu.dot_dimension_numbers<[1], [0], [0], [1], [0, 0, 1, 1], [], []>} : vector<8x8xf32>, vector<8x384xf32>, vector<8x384xf32> -> vector<8x384xf32>
    %39 = arith.addf %34, %38 : vector<8x384xf32>
    %c365_i32 = arith.constant 365 : i32
    %40 = tpu.dynamic_rotate %1 by %c365_i32 dim 1 : vector<8x384xf32>, i32 -> vector<8x384xf32>
    %c8 = arith.constant 8 : index
    %c0_26 = arith.constant 0 : index
    %c0_27 = arith.constant 0 : index
    %41 = vector.load %arg2[%c8, %c0_26, %c0_27] : memref<9x8x8xf32, #tpu.memory_space<vmem>>, vector<1x8x8xf32>
    %42 = vector.shape_cast %41 : vector<1x8x8xf32> to vector<8x8xf32>
    %cst_28 = arith.constant dense<0.000000e+00> : vector<8x384xf32>
    %43 = tpu.matmul %42, %40, %cst_28 {dimension_numbers = #tpu.dot_dimension_numbers<[1], [0], [0], [1], [0, 0, 1, 1], [], []>} : vector<8x8xf32>, vector<8x384xf32>, vector<8x384xf32> -> vector<8x384xf32>
    %44 = arith.addf %39, %43 : vector<8x384xf32>
    %c0_29 = arith.constant 0 : index
    %c0_30 = arith.constant 0 : index
    %45 = vector.load %arg4[%c0_29, %c0_30] : memref<8x1xf32, #tpu.memory_space<vmem>>, vector<8x1xf32>
    %46 = vector.broadcast %45 : vector<8x1xf32> to vector<8x384xf32>
    %47 = arith.mulf %44, %46 : vector<8x384xf32>
    %c0_31 = arith.constant 0 : index
    %c0_32 = arith.constant 0 : index
    %48 = vector.load %arg5[%c0_31, %c0_32] : memref<8x1xf32, #tpu.memory_space<vmem>>, vector<8x1xf32>
    %49 = vector.broadcast %48 : vector<8x1xf32> to vector<8x384xf32>
    %50 = arith.addf %47, %49 : vector<8x384xf32>
    %cst_33 = arith.constant 0.000000e+00 : f32
    %51 = vector.broadcast %cst_33 : f32 to vector<8x384xf32>
    %52 = arith.maximumf %50, %51 : vector<8x384xf32>
    %c0_34 = arith.constant 0 : index
    %c0_35 = arith.constant 0 : index
    %53 = vector.load %arg8[%c0_34, %c0_35] : memref<1x384xf32, #tpu.memory_space<vmem>>, vector<1x384xf32>
    %54 = vector.broadcast %53 : vector<1x384xf32> to vector<8x384xf32>
    %55 = arith.mulf %52, %54 : vector<8x384xf32>
    %c19_i32_36 = arith.constant 19 : i32
    %56 = tpu.dynamic_rotate %55 by %c19_i32_36 dim 1 : vector<8x384xf32>, i32 -> vector<8x384xf32>
    %c0_37 = arith.constant 0 : index
    %c0_38 = arith.constant 0 : index
    %c0_39 = arith.constant 0 : index
    %57 = vector.load %arg3[%c0_37, %c0_38, %c0_39] : memref<9x8x8xf32, #tpu.memory_space<vmem>>, vector<1x8x8xf32>
    %58 = vector.shape_cast %57 : vector<1x8x8xf32> to vector<8x8xf32>
    %cst_40 = arith.constant dense<0.000000e+00> : vector<8x384xf32>
    %59 = tpu.matmul %58, %56, %cst_40 {dimension_numbers = #tpu.dot_dimension_numbers<[1], [0], [0], [1], [0, 0, 1, 1], [], []>} : vector<8x8xf32>, vector<8x384xf32>, vector<8x384xf32> -> vector<8x384xf32>
    %c18_i32_41 = arith.constant 18 : i32
    %60 = tpu.dynamic_rotate %55 by %c18_i32_41 dim 1 : vector<8x384xf32>, i32 -> vector<8x384xf32>
    %c1_42 = arith.constant 1 : index
    %c0_43 = arith.constant 0 : index
    %c0_44 = arith.constant 0 : index
    %61 = vector.load %arg3[%c1_42, %c0_43, %c0_44] : memref<9x8x8xf32, #tpu.memory_space<vmem>>, vector<1x8x8xf32>
    %62 = vector.shape_cast %61 : vector<1x8x8xf32> to vector<8x8xf32>
    %cst_45 = arith.constant dense<0.000000e+00> : vector<8x384xf32>
    %63 = tpu.matmul %62, %60, %cst_45 {dimension_numbers = #tpu.dot_dimension_numbers<[1], [0], [0], [1], [0, 0, 1, 1], [], []>} : vector<8x8xf32>, vector<8x384xf32>, vector<8x384xf32> -> vector<8x384xf32>
    %64 = arith.addf %59, %63 : vector<8x384xf32>
    %c17_i32_46 = arith.constant 17 : i32
    %65 = tpu.dynamic_rotate %55 by %c17_i32_46 dim 1 : vector<8x384xf32>, i32 -> vector<8x384xf32>
    %c2_47 = arith.constant 2 : index
    %c0_48 = arith.constant 0 : index
    %c0_49 = arith.constant 0 : index
    %66 = vector.load %arg3[%c2_47, %c0_48, %c0_49] : memref<9x8x8xf32, #tpu.memory_space<vmem>>, vector<1x8x8xf32>
    %67 = vector.shape_cast %66 : vector<1x8x8xf32> to vector<8x8xf32>
    %cst_50 = arith.constant dense<0.000000e+00> : vector<8x384xf32>
    %68 = tpu.matmul %67, %65, %cst_50 {dimension_numbers = #tpu.dot_dimension_numbers<[1], [0], [0], [1], [0, 0, 1, 1], [], []>} : vector<8x8xf32>, vector<8x384xf32>, vector<8x384xf32> -> vector<8x384xf32>
    %69 = arith.addf %64, %68 : vector<8x384xf32>
    %c1_i32_51 = arith.constant 1 : i32
    %70 = tpu.dynamic_rotate %55 by %c1_i32_51 dim 1 : vector<8x384xf32>, i32 -> vector<8x384xf32>
    %c3_52 = arith.constant 3 : index
    %c0_53 = arith.constant 0 : index
    %c0_54 = arith.constant 0 : index
    %71 = vector.load %arg3[%c3_52, %c0_53, %c0_54] : memref<9x8x8xf32, #tpu.memory_space<vmem>>, vector<1x8x8xf32>
    %72 = vector.shape_cast %71 : vector<1x8x8xf32> to vector<8x8xf32>
    %cst_55 = arith.constant dense<0.000000e+00> : vector<8x384xf32>
    %73 = tpu.matmul %72, %70, %cst_55 {dimension_numbers = #tpu.dot_dimension_numbers<[1], [0], [0], [1], [0, 0, 1, 1], [], []>} : vector<8x8xf32>, vector<8x384xf32>, vector<8x384xf32> -> vector<8x384xf32>
    %74 = arith.addf %69, %73 : vector<8x384xf32>
    %c4_56 = arith.constant 4 : index
    %c0_57 = arith.constant 0 : index
    %c0_58 = arith.constant 0 : index
    %75 = vector.load %arg3[%c4_56, %c0_57, %c0_58] : memref<9x8x8xf32, #tpu.memory_space<vmem>>, vector<1x8x8xf32>
    %76 = vector.shape_cast %75 : vector<1x8x8xf32> to vector<8x8xf32>
    %cst_59 = arith.constant dense<0.000000e+00> : vector<8x384xf32>
    %77 = tpu.matmul %76, %55, %cst_59 {dimension_numbers = #tpu.dot_dimension_numbers<[1], [0], [0], [1], [0, 0, 1, 1], [], []>} : vector<8x8xf32>, vector<8x384xf32>, vector<8x384xf32> -> vector<8x384xf32>
    %78 = arith.addf %74, %77 : vector<8x384xf32>
    %c383_i32_60 = arith.constant 383 : i32
    %79 = tpu.dynamic_rotate %55 by %c383_i32_60 dim 1 : vector<8x384xf32>, i32 -> vector<8x384xf32>
    %c5_61 = arith.constant 5 : index
    %c0_62 = arith.constant 0 : index
    %c0_63 = arith.constant 0 : index
    %80 = vector.load %arg3[%c5_61, %c0_62, %c0_63] : memref<9x8x8xf32, #tpu.memory_space<vmem>>, vector<1x8x8xf32>
    %81 = vector.shape_cast %80 : vector<1x8x8xf32> to vector<8x8xf32>
    %cst_64 = arith.constant dense<0.000000e+00> : vector<8x384xf32>
    %82 = tpu.matmul %81, %79, %cst_64 {dimension_numbers = #tpu.dot_dimension_numbers<[1], [0], [0], [1], [0, 0, 1, 1], [], []>} : vector<8x8xf32>, vector<8x384xf32>, vector<8x384xf32> -> vector<8x384xf32>
    %83 = arith.addf %78, %82 : vector<8x384xf32>
    %c367_i32_65 = arith.constant 367 : i32
    %84 = tpu.dynamic_rotate %55 by %c367_i32_65 dim 1 : vector<8x384xf32>, i32 -> vector<8x384xf32>
    %c6_66 = arith.constant 6 : index
    %c0_67 = arith.constant 0 : index
    %c0_68 = arith.constant 0 : index
    %85 = vector.load %arg3[%c6_66, %c0_67, %c0_68] : memref<9x8x8xf32, #tpu.memory_space<vmem>>, vector<1x8x8xf32>
    %86 = vector.shape_cast %85 : vector<1x8x8xf32> to vector<8x8xf32>
    %cst_69 = arith.constant dense<0.000000e+00> : vector<8x384xf32>
    %87 = tpu.matmul %86, %84, %cst_69 {dimension_numbers = #tpu.dot_dimension_numbers<[1], [0], [0], [1], [0, 0, 1, 1], [], []>} : vector<8x8xf32>, vector<8x384xf32>, vector<8x384xf32> -> vector<8x384xf32>
    %88 = arith.addf %83, %87 : vector<8x384xf32>
    %c366_i32_70 = arith.constant 366 : i32
    %89 = tpu.dynamic_rotate %55 by %c366_i32_70 dim 1 : vector<8x384xf32>, i32 -> vector<8x384xf32>
    %c7_71 = arith.constant 7 : index
    %c0_72 = arith.constant 0 : index
    %c0_73 = arith.constant 0 : index
    %90 = vector.load %arg3[%c7_71, %c0_72, %c0_73] : memref<9x8x8xf32, #tpu.memory_space<vmem>>, vector<1x8x8xf32>
    %91 = vector.shape_cast %90 : vector<1x8x8xf32> to vector<8x8xf32>
    %cst_74 = arith.constant dense<0.000000e+00> : vector<8x384xf32>
    %92 = tpu.matmul %91, %89, %cst_74 {dimension_numbers = #tpu.dot_dimension_numbers<[1], [0], [0], [1], [0, 0, 1, 1], [], []>} : vector<8x8xf32>, vector<8x384xf32>, vector<8x384xf32> -> vector<8x384xf32>
    %93 = arith.addf %88, %92 : vector<8x384xf32>
    %c365_i32_75 = arith.constant 365 : i32
    %94 = tpu.dynamic_rotate %55 by %c365_i32_75 dim 1 : vector<8x384xf32>, i32 -> vector<8x384xf32>
    %c8_76 = arith.constant 8 : index
    %c0_77 = arith.constant 0 : index
    %c0_78 = arith.constant 0 : index
    %95 = vector.load %arg3[%c8_76, %c0_77, %c0_78] : memref<9x8x8xf32, #tpu.memory_space<vmem>>, vector<1x8x8xf32>
    %96 = vector.shape_cast %95 : vector<1x8x8xf32> to vector<8x8xf32>
    %cst_79 = arith.constant dense<0.000000e+00> : vector<8x384xf32>
    %97 = tpu.matmul %96, %94, %cst_79 {dimension_numbers = #tpu.dot_dimension_numbers<[1], [0], [0], [1], [0, 0, 1, 1], [], []>} : vector<8x8xf32>, vector<8x384xf32>, vector<8x384xf32> -> vector<8x384xf32>
    %98 = arith.addf %93, %97 : vector<8x384xf32>
    %c0_80 = arith.constant 0 : index
    %c0_81 = arith.constant 0 : index
    %99 = vector.load %arg6[%c0_80, %c0_81] : memref<8x1xf32, #tpu.memory_space<vmem>>, vector<8x1xf32>
    %100 = vector.broadcast %99 : vector<8x1xf32> to vector<8x384xf32>
    %101 = arith.mulf %98, %100 : vector<8x384xf32>
    %c0_82 = arith.constant 0 : index
    %c0_83 = arith.constant 0 : index
    %102 = vector.load %arg7[%c0_82, %c0_83] : memref<8x1xf32, #tpu.memory_space<vmem>>, vector<8x1xf32>
    %103 = vector.broadcast %102 : vector<8x1xf32> to vector<8x384xf32>
    %104 = arith.addf %101, %103 : vector<8x384xf32>
    %105 = arith.subf %104, %1 : vector<8x384xf32>
    %cst_84 = arith.constant 0.000000e+00 : f32
    %106 = vector.broadcast %cst_84 : f32 to vector<8x384xf32>
    %107 = arith.maximumf %105, %106 : vector<8x384xf32>
    %c0_85 = arith.constant 0 : index
    %c0_86 = arith.constant 0 : index
    %c0_87 = arith.constant 0 : index
    %108 = vector.load %arg9[%c0_85, %c0_86, %c0_87] : memref<1x8x384xf32, #tpu.memory_space<vmem>>, vector<1x8x384xf32>
    %109 = vector.shape_cast %108 : vector<1x8x384xf32> to vector<8x384xf32>
    %110 = vector.shape_cast %107 : vector<8x384xf32> to vector<1x8x384xf32>
    tpu.vector_store %arg9[%c0_85, %c0_86, %c0_87], %110 {strides = array<i32>} : memref<1x8x384xf32, #tpu.memory_space<vmem>>, vector<1x8x384xf32>,
    return
  }
  func.func @transform_0(%arg0: i32) -> (i32, i32, i32) {
    %c0_i32 = arith.constant 0 : i32
    %c0_i32_0 = arith.constant 0 : i32
    %c0_i32_1 = arith.constant 0 : i32
    return %arg0, %c0_i32, %c0_i32_0 : i32, i32, i32
  }
  func.func @transform_1(%arg0: i32) -> (i32, i32, i32) {
    %c0_i32 = arith.constant 0 : i32
    %c0_i32_0 = arith.constant 0 : i32
    %c0_i32_1 = arith.constant 0 : i32
    %c0_i32_2 = arith.constant 0 : i32
    return %c0_i32, %c0_i32_0, %c0_i32_1 : i32, i32, i32
  }
  func.func @transform_2(%arg0: i32) -> (i32, i32, i32) {
    %c0_i32 = arith.constant 0 : i32
    %c0_i32_0 = arith.constant 0 : i32
    %c0_i32_1 = arith.constant 0 : i32
    %c0_i32_2 = arith.constant 0 : i32
    return %c0_i32, %c0_i32_0, %c0_i32_1 : i32, i32, i32
  }
  func.func @transform_3(%arg0: i32) -> (i32, i32) {
    %c0_i32 = arith.constant 0 : i32
    %c0_i32_0 = arith.constant 0 : i32
    %c0_i32_1 = arith.constant 0 : i32
    return %c0_i32, %c0_i32_0 : i32, i32
  }
  func.func @transform_4(%arg0: i32) -> (i32, i32) {
    %c0_i32 = arith.constant 0 : i32
    %c0_i32_0 = arith.constant 0 : i32
    %c0_i32_1 = arith.constant 0 : i32
    return %c0_i32, %c0_i32_0 : i32, i32
  }
  func.func @transform_5(%arg0: i32) -> (i32, i32) {
    %c0_i32 = arith.constant 0 : i32
    %c0_i32_0 = arith.constant 0 : i32
    %c0_i32_1 = arith.constant 0 : i32
    return %c0_i32, %c0_i32_0 : i32, i32
  }
  func.func @transform_6(%arg0: i32) -> (i32, i32) {
    %c0_i32 = arith.constant 0 : i32
    %c0_i32_0 = arith.constant 0 : i32
    %c0_i32_1 = arith.constant 0 : i32
    return %c0_i32, %c0_i32_0 : i32, i32
  }
  func.func @transform_7(%arg0: i32) -> (i32, i32) {
    %c0_i32 = arith.constant 0 : i32
    %c0_i32_0 = arith.constant 0 : i32
    %c0_i32_1 = arith.constant 0 : i32
    return %c0_i32, %c0_i32_0 : i32, i32
  }
  func.func @transform_8(%arg0: i32) -> (i32, i32, i32) {
    %c0_i32 = arith.constant 0 : i32
    %c0_i32_0 = arith.constant 0 : i32
    %c0_i32_1 = arith.constant 0 : i32
    return %arg0, %c0_i32, %c0_i32_0 : i32, i32, i32
  }
}

</mosaic_0001>

<bundles_post_ra>
// kernel: tpu_custom_call.1
= control target key start
LH: loop header
LB: loop body
LE: loop exit
PB: predicated region body
PF: predicated region fallthrough
CT: control target
= control target key end

     0   :  { %13 = vsyncpa [#allocation3], 0  ;;  %s4125_s0 = inlined_call_operand.vmem [shape: f32[2,8,384], index: 0, kind: input, shape index: {}]   ;;  %s4126_s1 = inlined_call_operand.vmem [shape: f32[9,8,8], index: 1, kind: input, shape index: {}]   ;;  %s4127_s2 = inlined_call_operand.vmem [shape: f32[9,8,8], index: 2, kind: input, shape index: {}]   ;;  %s4128_s3 = inlined_call_operand.vmem [shape: f32[8,1], index: 3, kind: input, shape index: {}]   ;;  %s4129_s4 = inlined_call_operand.vmem [shape: f32[8,1], index: 4, kind: input, shape index: {}]   ;;  %s4130_s5 = inlined_call_operand.vmem [shape: f32[8,1], index: 5, kind: input, shape index: {}]   ;;  %s4131_s6 = inlined_call_operand.vmem [shape: f32[8,1], index: 6, kind: input, shape index: {}]   ;;  %s4132_s7 = inlined_call_operand.vmem [shape: f32[1,384], index: 7, kind: input, shape index: {}]   ;;  %s4133_s8 = inlined_call_operand.hbm [shape: f32[2,8,384], index: 8, kind: output, shape index: {}]  }
   0x1   :  { %15 = vsyncpa [#allocation3 + $0x1], 0  ;;  %s3632_s27 = smov 0   ;;  %s3634_s28 = smov 0  }
   0x2   :  { %s3636_s29 = smov 0   ;;  %s3638_s30 = smov 0  }
   0x3 LB: > { %s3653_s9 = sadd.s32 4294967295, %s3573_s30   ;;  %s3272_s10 = sadd.s32 4294967294, %s3573_s30   ;;  %s3573_s30 = sphi %s3638_s30, %s4139_s30   ;;  %s3569_s29 = sphi %s3636_s29, %s4138_s29   ;;  %s3565_s28 = sphi %s3634_s28, %s4137_s28   ;;  %s3561_s27 = sphi %s3632_s27, %s4136_s27  }
   0x4   : > { %s3657_s11 = sadd.s32 1, %s3573_s30   ;;  %s201_s12 = sadd.s32 1, %s3569_s29 }
   0x5   : > { %s198_s13 = ssub.s32 %s3573_s30, %s3657_s11  ;;  %p211_p0 = scmp.ne.s32.totalorder %s3569_s29, %s3565_s28 }
   0x6   : > { %p199_p1 = scmp.eq.s32.totalorder %s198_s13, 0  ;;  %p212_p2 = scmp.eq.s32.totalorder %s3653_s9, 1 }
   0x7   : > { %p217_p3 = scmp.ne.s32.totalorder %s3565_s28, %s3561_s27  ;;  %p218_p4 = scmp.eq.s32.totalorder %s3272_s10, 1 }
   0x8   : > { %s3668_s14 = scalar_select %p199_p1, %s3569_s29, %s201_s12  }
   0x9   : > { %p3670_p5 = por %p212_p2, %p211_p0  ;;  %p3674_p6 = por %p218_p4, %p217_p3 }
   0xa   : > { %p3275_p7 = scmp.ge.s32.totalorder %s3573_s30, 1  ;;  %p265_p8 = scmp.lt.s32.totalorder %s3573_s30, 3 }
   0xc   : > { %p266_p9 = pnand %p3275_p7, %p265_p8 }
   0xd   : > { %p299_p10 = scmp.lt.s32.totalorder (!%p266_p9), %s3653_s9, 1  ;;  %s3577_s22 = smov (!%p266_p9), 18  }
   0xe   : > { %269 = sbr.rel (%p266_p9) target bundleno = 769 (0x301), region = 52  ;;  %s3578_s23 = smov (!%p266_p9), 19  }
   0xf   : > { %s3579_s24 = smov (!%p266_p9), 17   ;;  %s3580_s25 = smov (!%p266_p9), 1  }
  0x10   : > { %s3581_s26 = smov (!%p266_p9), 127   ;;  %s3582_s10 = smov (!%p266_p9), 111  }
  0x11   : > { %s3584_s12 = smov (!%p266_p9), 110   ;;  %s3585_s13 = smov (!%p266_p9), 109  }
  0x12   : > { %s3460_s19 = smul.u32 (!%p266_p9), 384, %s3653_s9 }
  0x13   : > { %v3575_v0 = vmov 0.0   ;;  %s300_s17 = scalar_select %p299_p10, %s3653_s9, 1  ;;  %vm3576_vm0 = vmmov 0   ;;  %v3583_v4 = vmov 0   ;;  %v1724_v5 = vld [vmem:[%s4128_s3] sm:$0xff]  ;;  %v313_v7 = vlaneseq  ;;  %v3277_v15 = vld [vmem:[%s4126_s1 + $0x8] sm:$0xff] }
  0x14   : > { %3368 = vmatprep.subr.mxu1 %v3575_v0  ;;  %400 = vmatprep.mubr.f32.mxu0 %v3575_v0  ;;  %v1733_v6 = vld [vmem:[%s4129_s4] sm:$0xff]  ;;  %vm332_vm2 = vcmask 64512   ;;  %v3282_v28 = vld [vmem:[%s4126_s1 + $0x10] sm:$0xff]  ;;  %v3285_v33 = vld [vmem:[%s4126_s1 + $0x18] sm:$0xff]  ;;  %s3586_s9 = smov [#allocation2]  }
  0x15   : > { %3370 = vmatprep.mubr.msk.f32.mxu1 %vm3576_vm0, %v3575_v0  ;;  %s3459_s18 = smul.u32 24, %s300_s17  ;;  %3511 = vset.pattern.permute.xlu0 %v3583_v4  ;;  %v3750_v8 = vand.u32 127, %v313_v7  ;;  %v319_v22 = vld [vmem:[%s4126_s1] sm:$0xff]  ;;  %v3291_v45 = vld [vmem:[%s4126_s1 + $0x28] sm:$0xff]  ;;  %v3294_v51 = vld [vmem:[%s4126_s1 + $0x30] sm:$0xff]  ;;  %s296_s17 = sand.u32 1, %s3565_s28  }
  0x16   : > { %3512 = vset.pattern.permute.xlu1 %v3583_v4  ;;  %v3288_v40 = vld [vmem:[%s4126_s1 + $0x20] sm:$0xff]  ;;  %v3297_v57 = vld [vmem:[%s4126_s1 + $0x38] sm:$0xff] }
  0x17   : > { %s303_s21 = scalar_lea.vmem %s4125_s0, %s3459_s18  ;;  %vm326_vm1 = vcmp.lt.s32.totalorder %v3750_v8, 18  ;;  %vm315_vm3 = vcmp.lt.s32.totalorder %v3750_v8, 19  ;;  %vm627_vm4 = vcmp.lt.s32.totalorder %v3750_v8, 17  ;;  %vm786_vm5 = vcmp.lt.s32.totalorder %v3750_v8, 1  ;;  %v3300_v62 = vld [vmem:[%s4126_s1 + $0x40] sm:$0xff]  ;;  %s3458_s18 = smul.u32 24, %s296_s17 }
  0x18   : > { %v3689_v1 = vld [vmem:[%s303_s21 + $0x10] sm:$0xff]  ;;  %v3691_v2 = vld [vmem:[%s303_s21] sm:$0xff]  ;;  %v3697_v3 = vld [vmem:[%s303_s21 + $0x8] sm:$0xff]  ;;  %vm1094_vm6 = vcmp.lt.s32.totalorder %v3750_v8, 127  ;;  %vm1253_vm7 = vcmp.lt.s32.totalorder %v3750_v8, 111  ;;  %vm1412_vm8 = vcmp.lt.s32.totalorder %v3750_v8, 110 }
  0x19   : > { %324 = vrot.lane.b32.xlu1 %v3689_v1, %s3577_s22  ;;  %320 = vrot.lane.b32.xlu0 %v3691_v2, %s3577_s22  ;;  %vm1571_vm9 = vcmp.lt.s32.totalorder %v3750_v8, 109  ;;  %s298_s20 = scalar_lea.vmem [#allocation2], %s3458_s18 }
  0x1d   : > { %307 = vrot.lane.b32.xlu1 %v3691_v2, %s3578_s23  ;;  %322 = vrot.lane.b32.xlu0 %v3697_v3, %s3577_s22 }
  0x21   : > { %311 = vrot.lane.b32.xlu1 %v3689_v1, %s3578_s23  ;;  %309 = vrot.lane.b32.xlu0 %v3697_v3, %s3578_s23 }
  0x25   : > { %623 = vrot.lane.b32.xlu1 %v3697_v3, %s3579_s24  ;;  %621 = vrot.lane.b32.xlu0 %v3691_v2, %s3579_s24 }
  0x29   : > { %780 = vrot.lane.b32.xlu1 %v3691_v2, %s3580_s25  ;;  %625 = vrot.lane.b32.xlu0 %v3689_v1, %s3579_s24 }
  0x2d   : > { %784 = vrot.lane.b32.xlu1 %v3689_v1, %s3580_s25  ;;  %782 = vrot.lane.b32.xlu0 %v3697_v3, %s3580_s25 }
  0x31   : > { %1092 = vrot.lane.b32.xlu1 %v3689_v1, %s3581_s26  ;;  %1090 = vrot.lane.b32.xlu0 %v3697_v3, %s3581_s26 }
  0x35   : > { %1249 = vrot.lane.b32.xlu1 %v3697_v3, %s3582_s10  ;;  %1088 = vrot.lane.b32.xlu0 %v3691_v2, %s3581_s26 }
  0x39   : > { %1247 = vrot.lane.b32.xlu1 %v3691_v2, %s3582_s10  ;;  %1251 = vrot.lane.b32.xlu0 %v3689_v1, %s3582_s10 }
  0x3d   : > { %1410 = vrot.lane.b32.xlu1 %v3689_v1, %s3584_s12  ;;  %1408 = vrot.lane.b32.xlu0 %v3697_v3, %s3584_s12 }
  0x41   : > { %1567 = vrot.lane.b32.xlu1 %v3697_v3, %s3585_s13  ;;  %1406 = vrot.lane.b32.xlu0 %v3691_v2, %s3584_s12 }
  0x45   : > { %1565 = vrot.lane.b32.xlu1 %v3691_v2, %s3585_s13  ;;  %1569 = vrot.lane.b32.xlu0 %v3689_v1, %s3585_s13 }
  0x49   : > { %1727 = vperm.xlu0 %3511, %v1724_v5   ;;  %1736 = vperm.xlu1 %3512, %v1733_v6  }
  0x8b   : > { %v325_v9 = vpop.permute.xlu1 %324  ;;  %v321_v10 = vpop.permute.xlu0 %320 }
  0x8c   : > { %v329_v16 = vsel %vm326_vm1, %v325_v9, %v321_v10 }
  0x8f   : > { %v308_v11 = vpop.permute.xlu1 %307  ;;  %v323_v12 = vpop.permute.xlu0 %322 }
  0x90   : > { %v328_v13 = vsel %vm326_vm1, %v321_v10, %v323_v12  ;;  %v327_v14 = vsel %vm326_vm1, %v323_v12, %v325_v9 }
  0x91   : > { %366 = vmatprep.subr.mxu0 %v328_v13  ;;  %3369 = vmatpush3.msra.mxu1 %v327_v14 }
  0x92   : > { %367 = vmatpush1.msra.mxu0 %v329_v16  ;;  %3373 = vmatprep.subr.mxu1 %v3575_v0 }
  0x93   : > { %v312_v17 = vpop.permute.xlu1 %311  ;;  %v310_v18 = vpop.permute.xlu0 %309  ;;  %3371 = vmatmul.mubr.msk.f32.vlgmr.msra.gmra.mxu1 %vm332_vm2, %v3277_v15  ;;  %3278 = vmatmul.mubr.msk.f32.vlgmr.msra.gmra.mxu0 %vm332_vm2, %v3277_v15 }
  0x94   : > { %v318_v19 = vsel %vm315_vm3, %v312_v17, %v308_v11  ;;  %v316_v20 = vsel %vm315_vm3, %v310_v18, %v312_v17  ;;  %v317_v21 = vsel %vm315_vm3, %v308_v11, %v310_v18  ;;  %3375 = vmatprep.mubr.msk.f32.mxu1 %vm3576_vm0, %v3575_v0  ;;  %544 = vmatprep.mubr.f32.mxu0 %v3575_v0 }
  0x95   : > { %510 = vmatprep.subr.mxu0 %v317_v21  ;;  %3374 = vmatpush3.msra.mxu1 %v316_v20 }
  0x96   : > { %511 = vmatpush1.msra.mxu0 %v318_v19  ;;  %3378 = vmatprep.subr.mxu1 %v3575_v0 }
  0x97   : > { %v624_v23 = vpop.permute.xlu1 %623  ;;  %v622_v24 = vpop.permute.xlu0 %621  ;;  %3376 = vmatmul.mubr.msk.f32.vlgmr.msra.gmra.mxu1 %vm332_vm2, %v319_v22  ;;  %3280 = vmatmul.mubr.msk.f32.vlgmr.msra.gmra.mxu0 %vm332_vm2, %v319_v22 }
  0x98   : > { %v629_v25 = vsel %vm627_vm4, %v622_v24, %v624_v23  ;;  %3380 = vmatprep.mubr.msk.f32.mxu1 %vm3576_vm0, %v3575_v0  ;;  %700 = vmatprep.mubr.f32.mxu0 %v3575_v0 }
  0x99   : > { %666 = vmatprep.subr.mxu0 %v629_v25 }
  0x9b   : > { %v781_v26 = vpop.permute.xlu1 %780  ;;  %v626_v27 = vpop.permute.xlu0 %625 }
  0x9c   : > { %v628_v29 = vsel %vm627_vm4, %v624_v23, %v626_v27  ;;  %v630_v30 = vsel %vm627_vm4, %v626_v27, %v622_v24 }
  0x9d   : > { %667 = vmatpush1.msra.mxu0 %v630_v30  ;;  %3379 = vmatpush3.msra.mxu1 %v628_v29 }
  0x9e   : > { %3381 = vmatmul.mubr.msk.f32.vlgmr.msra.gmra.mxu1 %vm332_vm2, %v3282_v28  ;;  %3283 = vmatmul.mubr.msk.f32.vlgmr.msra.gmra.mxu0 %vm332_vm2, %v3282_v28 }
  0x9f   : > { %v785_v31 = vpop.permute.xlu1 %784  ;;  %v783_v32 = vpop.permute.xlu0 %782  ;;  %3383 = vmatprep.subr.mxu1 %v3575_v0  ;;  %3385 = vmatprep.mubr.msk.f32.mxu1 %vm3576_vm0, %v3575_v0 }
  0xa0   : > { %v789_v34 = vsel %vm786_vm5, %v785_v31, %v781_v26  ;;  %v787_v35 = vsel %vm786_vm5, %v783_v32, %v785_v31  ;;  %v788_v36 = vsel %vm786_vm5, %v781_v26, %v783_v32  ;;  %859 = vmatprep.mubr.f32.mxu0 %v3575_v0 }
  0xa1   : > { %825 = vmatprep.subr.mxu0 %v788_v36  ;;  %3384 = vmatpush3.msra.mxu1 %v787_v35 }
  0xa2   : > { %826 = vmatpush1.msra.mxu0 %v789_v34  ;;  %3386 = vmatmul.mubr.msk.f32.vlgmr.msra.gmra.mxu1 %vm332_vm2, %v3285_v33 }
  0xa3   : > { %v1093_v37 = vpop.permute.xlu1 %1092  ;;  %3286 = vmatmul.mubr.msk.f32.vlgmr.msra.gmra.mxu0 %vm332_vm2, %v3285_v33  ;;  %974 = vmatprep.subr.mxu0 %v3697_v3  ;;  %v1091_v38 = vpop.permute.xlu0 %1090 }
  0xa4   : > { %975 = vmatpush1.msra.mxu0 %v3691_v2  ;;  %3388 = vmatprep.subr.mxu1 %v3575_v0  ;;  %v1095_v39 = vsel %vm1094_vm6, %v1091_v38, %v1093_v37 }
  0xa5   : > { %3389 = vmatpush3.msra.mxu1 %v3689_v1  ;;  %3390 = vmatprep.mubr.msk.f32.mxu1 %vm3576_vm0, %v3575_v0 }
  0xa6   : > { %1133 = vmatprep.subr.mxu0 %v1095_v39  ;;  %1008 = vmatprep.mubr.f32.mxu0 %v3575_v0 }
  0xa7   : > { %3391 = vmatmul.mubr.msk.f32.vlgmr.msra.gmra.mxu1 %vm332_vm2, %v3288_v40  ;;  %v1250_v41 = vpop.permute.xlu1 %1249  ;;  %3289 = vmatmul.mubr.msk.f32.vlgmr.msra.gmra.mxu0 %vm332_vm2, %v3288_v40  ;;  %v1089_v42 = vpop.permute.xlu0 %1088 }
  0xa8   : > { %v1096_v43 = vsel %vm1094_vm6, %v1089_v42, %v1091_v38  ;;  %v1097_v44 = vsel %vm1094_vm6, %v1093_v37, %v1089_v42  ;;  %3393 = vmatprep.subr.mxu1 %v3575_v0  ;;  %3395 = vmatprep.mubr.msk.f32.mxu1 %vm3576_vm0, %v3575_v0 }
  0xa9   : > { %1134 = vmatpush1.msra.mxu0 %v1096_v43  ;;  %3394 = vmatpush3.msra.mxu1 %v1097_v44 }
  0xaa   : > { %1167 = vmatprep.mubr.f32.mxu0 %v3575_v0  ;;  %3398 = vmatprep.subr.mxu1 %v3575_v0 }
  0xab   : > { %3396 = vmatmul.mubr.msk.f32.vlgmr.msra.gmra.mxu1 %vm332_vm2, %v3291_v45  ;;  %v1248_v46 = vpop.permute.xlu1 %1247  ;;  %3292 = vmatmul.mubr.msk.f32.vlgmr.msra.gmra.mxu0 %vm332_vm2, %v3291_v45  ;;  %v1252_v47 = vpop.permute.xlu0 %1251 }
  0xac   : > { %v1255_v48 = vsel %vm1253_vm7, %v1248_v46, %v1250_v41  ;;  %v1256_v49 = vsel %vm1253_vm7, %v1252_v47, %v1248_v46  ;;  %v1254_v50 = vsel %vm1253_vm7, %v1250_v41, %v1252_v47  ;;  %3400 = vmatprep.mubr.msk.f32.mxu1 %vm3576_vm0, %v3575_v0  ;;  %1326 = vmatprep.mubr.f32.mxu0 %v3575_v0 }
  0xad   : > { %1292 = vmatprep.subr.mxu0 %v1254_v50  ;;  %3399 = vmatpush3.msra.mxu1 %v1256_v49 }
  0xae   : > { %1293 = vmatpush1.msra.mxu0 %v1255_v48  ;;  %3403 = vmatprep.subr.mxu1 %v3575_v0 }
  0xaf   : > { %3401 = vmatmul.mubr.msk.f32.vlgmr.msra.gmra.mxu1 %vm332_vm2, %v3294_v51  ;;  %v1411_v52 = vpop.permute.xlu1 %1410  ;;  %3295 = vmatmul.mubr.msk.f32.vlgmr.msra.gmra.mxu0 %vm332_vm2, %v3294_v51  ;;  %v1409_v53 = vpop.permute.xlu0 %1408 }
  0xb0   : > { %v1413_v54 = vsel %vm1412_vm8, %v1409_v53, %v1411_v52  ;;  %1485 = vmatprep.mubr.f32.mxu0 %v3575_v0  ;;  %3405 = vmatprep.mubr.msk.f32.mxu1 %vm3576_vm0, %v3575_v0 }
  0xb1   : > { %1451 = vmatprep.subr.mxu0 %v1413_v54 }
  0xb3   : > { %v1568_v55 = vpop.permute.xlu1 %1567  ;;  %v1407_v56 = vpop.permute.xlu0 %1406 }
  0xb4   : > { %v1414_v58 = vsel %vm1412_vm8, %v1407_v56, %v1409_v53  ;;  %v1415_v59 = vsel %vm1412_vm8, %v1411_v52, %v1407_v56  ;;  %v1748_v53 = vshrl.u32 %v313_v7, 7 }
  0xb5   : > { %1452 = vmatpush1.msra.mxu0 %v1414_v58  ;;  %3404 = vmatpush3.msra.mxu1 %v1415_v59 }
  0xb6   : > { %3298 = vmatmul.mubr.msk.f32.vlgmr.msra.gmra.mxu0 %vm332_vm2, %v3297_v57  ;;  %3406 = vmatmul.mubr.msk.f32.vlgmr.msra.gmra.mxu1 %vm332_vm2, %v3297_v57 }
  0xb7   : > { %v1566_v60 = vpop.permute.xlu1 %1565  ;;  %v1570_v61 = vpop.permute.xlu0 %1569  ;;  %3408 = vmatprep.subr.mxu1 %v3575_v0  ;;  %3410 = vmatprep.mubr.msk.f32.mxu1 %vm3576_vm0, %v3575_v0 }
  0xb8   : > { %v1573_v63 = vsel %vm1571_vm9, %v1566_v60, %v1568_v55  ;;  %v1574_v4 = vsel %vm1571_vm9, %v1570_v61, %v1566_v60  ;;  %v1572_v5 = vsel %vm1571_vm9, %v1568_v55, %v1570_v61  ;;  %1644 = vmatprep.mubr.f32.mxu0 %v3575_v0 }
  0xb9   : > { %1610 = vmatprep.subr.mxu0 %v1572_v5  ;;  %3409 = vmatpush3.msra.mxu1 %v1574_v4  ;;  %v1757_v5 = vsub.s32 2, %v1748_v53 }
  0xba   : > { %1611 = vmatpush1.msra.mxu0 %v1573_v63  ;;  %3411 = vmatmul.mubr.msk.f32.vlgmr.msra.gmra.mxu1 %vm332_vm2, %v3300_v62 }
  0xbb   : > { %3301 = vmatmul.mubr.msk.f32.vlgmr.msra.gmra.mxu0 %vm332_vm2, %v3300_v62  ;;  %3413 = vmatprep.subr.mxu1 %v3575_v0 }
  0xbc   : > { %3415 = vmatprep.mubr.msk.f32.mxu1 %vm3576_vm0, %v3575_v0  ;;  %1853 = vmatprep.mubr.f32.mxu0 %v3575_v0 }
  0xc4   : > { %v1728_v62 = vpop.permute.xlu0 %1727  ;;  %v1737_v7 = vpop.permute.xlu1 %1736 }
 0x153   : > { %v473_v6 = vpop.f32.mrf.mxu1  ;;  %v402_v9 = vpop.f32.mrf.mxu0 }
 0x155   : > { %v3372_v10 = vpop.f32.mrf.mxu1  ;;  %v404_v11 = vpop.f32.mrf.mxu0 }
 0x157   : > { %v617_v12 = vpop.f32.mrf.mxu1  ;;  %v546_v13 = vpop.f32.mrf.mxu0 }
 0x158   : > { %v547_v28 = vadd.f32 %v546_v13, %v402_v9  ;;  %v618_v31 = vadd.f32 %v617_v12, %v473_v6 }
 0x159   : > { %v3377_v14 = vpop.f32.mrf.mxu1  ;;  %v548_v15 = vpop.f32.mrf.mxu0 }
 0x15a   : > { %v549_v34 = vadd.f32 %v548_v15, %v404_v11  ;;  %v1745_v11 = vld [vmem:[%s4132_s7] sm:$0x7] }
 0x15e   : > { %v773_v16 = vpop.f32.mrf.mxu1  ;;  %v702_v17 = vpop.f32.mrf.mxu0 }
 0x15f   : > { %v777_v35 = vadd.f32 %v702_v17, %v547_v28  ;;  %v779_v36 = vadd.f32 %v773_v16, %v618_v31  ;;  %v1749_v16 = vsub.s32 0, %v1748_v53  ;;  %v1758_v17 = vrot.slane %v1745_v11, %v1757_v5  ;;  %v3180_v31 = vld [vmem:[%s4131_s6] sm:$0xff] }
 0x160   : > { %v3382_v18 = vpop.f32.mrf.mxu1  ;;  %v704_v19 = vpop.f32.mrf.mxu0  ;;  %v3314_v5 = vld [vmem:[%s4127_s2 + $0x20] sm:$0xff] }
 0x161   : > { %v778_v41 = vadd.f32 %v704_v19, %v549_v34 }
 0x162   : > { %v932_v20 = vpop.f32.mrf.mxu1 }
 0x163   : > { %v861_v21 = vpop.f32.mrf.mxu0  ;;  %v938_v39 = vadd.f32 %v932_v20, %v779_v36 }
 0x164   : > { %v3387_v22 = vpop.f32.mrf.mxu1  ;;  %v936_v42 = vadd.f32 %v861_v21, %v777_v35 }
 0x165   : > { %v863_v23 = vpop.f32.mrf.mxu0  ;;  %v1753_v22 = vsub.s32 1, %v1748_v53 }
 0x166   : > { %v937_v44 = vadd.f32 %v863_v23, %v778_v41  ;;  %v1750_v23 = vrot.slane %v1745_v11, %v1749_v16 }
 0x167   : > { %v1081_v24 = vpop.f32.mrf.mxu1  ;;  %v1010_v25 = vpop.f32.mrf.mxu0 }
 0x168   : > { %v1087_v43 = vadd.f32 %v1081_v24, %v938_v39  ;;  %v1085_v45 = vadd.f32 %v1010_v25, %v936_v42  ;;  %v3303_v39 = vld [vmem:[%s4127_s2 + $0x8] sm:$0xff] }
 0x169   : > { %v3392_v26 = vpop.f32.mrf.mxu1  ;;  %v1012_v27 = vpop.f32.mrf.mxu0 }
 0x16a   : > { %v1086_v48 = vadd.f32 %v1012_v27, %v937_v44  ;;  %v1754_v27 = vrot.slane %v1745_v11, %v1753_v22 }
 0x16b   : > { %v1240_v29 = vpop.f32.mrf.mxu1  ;;  %v1169_v30 = vpop.f32.mrf.mxu0 }
 0x16c   : > { %v1246_v47 = vadd.f32 %v1240_v29, %v1087_v43  ;;  %v1244_v49 = vadd.f32 %v1169_v30, %v1085_v45 }
 0x16d   : > { %v3397_v32 = vpop.f32.mrf.mxu1  ;;  %v1171_v33 = vpop.f32.mrf.mxu0 }
 0x16e   : > { %v1245_v54 = vadd.f32 %v1171_v33, %v1086_v48  ;;  %v3171_v32 = vld [vmem:[%s4130_s5] sm:$0xff] }
 0x16f   : > { %v1399_v37 = vpop.f32.mrf.mxu1  ;;  %v1328_v38 = vpop.f32.mrf.mxu0 }
 0x170   : > { %v1405_v52 = vadd.f32 %v1399_v37, %v1246_v47  ;;  %v1403_v55 = vadd.f32 %v1328_v38, %v1244_v49  ;;  %v1774_v47 = vld [vmem:[%s4127_s2] sm:$0xff] }
 0x171   : > { %v3402_v40 = vpop.f32.mrf.mxu1  ;;  %v1330_v46 = vpop.f32.mrf.mxu0 }
 0x172   : > { %v1404_v59 = vadd.f32 %v1330_v46, %v1245_v54 }
 0x176   : > { %v1487_v50 = vpop.f32.mrf.mxu0  ;;  %v1558_v51 = vpop.f32.mrf.mxu1 }
 0x177   : > { %v1564_v58 = vadd.f32 %v1558_v51, %v1405_v52  ;;  %v1562_v60 = vadd.f32 %v1487_v50, %v1403_v55  ;;  %v3308_v55 = vld [vmem:[%s4127_s2 + $0x10] sm:$0xff] }
 0x178   : > { %v1489_v56 = vpop.f32.mrf.mxu0  ;;  %v3407_v57 = vpop.f32.mrf.mxu1 }
 0x179   : > { %v1563_v6 = vadd.f32 %v1489_v56, %v1404_v59  ;;  %v3311_v59 = vld [vmem:[%s4127_s2 + $0x18] sm:$0xff] }
 0x17a   : > { %v1717_v61 = vpop.f32.mrf.mxu1 }
 0x17b   : > { %v1723_v63 = vadd.f32 %v1717_v61, %v1564_v58  ;;  %v1646_v4 = vpop.f32.mrf.mxu0 }
 0x17c   : > { %v1721_v9 = vadd.f32 %v1646_v4, %v1562_v60  ;;  %v3412_v10 = vpop.f32.mrf.mxu1 }
 0x17d   : > { %v1732_v12 = vmul.f32 %v1728_v62, %v1723_v63  ;;  %v1648_v13 = vpop.f32.mrf.mxu0 }
 0x17e   : > { %v1730_v14 = vmul.f32 %v1728_v62, %v1721_v9  ;;  %v1722_v15 = vadd.f32 %v1648_v13, %v1563_v6 }
 0x17f   : > { %v1741_v18 = vadd.f32 %v1737_v7, %v1732_v12  ;;  %v3317_v12 = vld [vmem:[%s4127_s2 + $0x28] sm:$0xff] }
 0x180   : > { %v1731_v19 = vmul.f32 %v1728_v62, %v1722_v15  ;;  %v1739_v20 = vadd.f32 %v1737_v7, %v1730_v14 }
 0x181   : > { %v1744_v21 = vmax.f32 %v1741_v18, 0.0  ;;  %v3320_v18 = vld [vmem:[%s4127_s2 + $0x30] sm:$0xff] }
 0x182   : > { %v1740_v24 = vadd.f32 %v1737_v7, %v1731_v19  ;;  %v1742_v25 = vmax.f32 %v1739_v20, 0.0 }
 0x183   : > { %v3896_v26 = vmul.f32 %v1758_v17, %v1744_v21 }
 0x184   : > { %v1743_v28 = vmax.f32 %v1740_v24, 0.0  ;;  %v3902_v29 = vmul.f32 %v1750_v23, %v1742_v25  ;;  %v3323_v24 = vld [vmem:[%s4127_s2 + $0x38] sm:$0xff] }
 0x185   : > { %1769 = vrot.lane.b32.xlu0 %v3896_v26, %s3578_s23  ;;  %1779 = vrot.lane.b32.xlu1 %v3896_v26, %s3577_s22 }
 0x186   : > { %v3908_v30 = vmul.f32 %v1754_v27, %v1743_v28 }
 0x189   : > { %2078 = vrot.lane.b32.xlu1 %v3896_v26, %s3579_s24  ;;  %1765 = vrot.lane.b32.xlu0 %v3902_v29, %s3578_s23 }
 0x18d   : > { %1777 = vrot.lane.b32.xlu0 %v3908_v30, %s3577_s22  ;;  %1775 = vrot.lane.b32.xlu1 %v3902_v29, %s3577_s22  ;;  %s3213_s22 = sshll.u32 %s298_s20, 4  ;;  %s3214_s22 = int_to_ptr.vmem [resolvable:$true] %s3213_s22 }
 0x191   : > { %2232 = vrot.lane.b32.xlu0 %v3902_v29, %s3580_s25  ;;  %2074 = vrot.lane.b32.xlu1 %v3902_v29, %s3579_s24 }
 0x195   : > { %2076 = vrot.lane.b32.xlu0 %v3908_v30, %s3579_s24  ;;  %1767 = vrot.lane.b32.xlu1 %v3908_v30, %s3578_s23 }
 0x199   : > { %2236 = vrot.lane.b32.xlu0 %v3896_v26, %s3580_s25  ;;  %2539 = vrot.lane.b32.xlu1 %v3902_v29, %s3581_s26 }
 0x19d   : > { %2543 = vrot.lane.b32.xlu0 %v3896_v26, %s3581_s26  ;;  %2234 = vrot.lane.b32.xlu1 %v3908_v30, %s3580_s25  ;;  %s3211_s25 = scalar_lea.hbm %s4133_s8, %s3460_s19 }
 0x1a1   : > { %2697 = vrot.lane.b32.xlu0 %v3902_v29, %s3582_s10  ;;  %2701 = vrot.lane.b32.xlu1 %v3896_v26, %s3582_s10 }
 0x1a5   : > { %2699 = vrot.lane.b32.xlu0 %v3908_v30, %s3582_s10  ;;  %2541 = vrot.lane.b32.xlu1 %v3908_v30, %s3581_s26  ;;  %s3199_s26 = scalar_lea.sflag [#allocation3], %s296_s17  ;;  %s3513_s10 = scalar_lea.vmem %s3214_s22, 384 }
 0x1a6   : > { %p3514_p11 = scmp.ne.s32.totalorder %s3214_s22, %s3513_s10 }
 0x1a8   : > { %p3515_p12 = pnand %p3514_p11, %p3670_p5 }
 0x1a9   : > { %2859 = vrot.lane.b32.xlu0 %v3896_v26, %s3584_s12  ;;  %2855 = vrot.lane.b32.xlu1 %v3902_v29, %s3584_s12 }
 0x1aa   : > { %p3516_p13 = pneg %p3515_p12 }
 0x1ad   : > { %3015 = vrot.lane.b32.xlu0 %v3908_v30, %s3585_s13  ;;  %2857 = vrot.lane.b32.xlu1 %v3908_v30, %s3584_s12  ;;  %s3517_s12 = sshll.u32 %s3586_s9, 4  ;;  %s3518_s12 = int_to_ptr.vmem [resolvable:$false] %s3517_s12 }
 0x1ae   : > { %p3520_p0 = scmp.lt.s32.totalorder %s3214_s22, %s3518_s12 }
 0x1b1   : > { %3013 = vrot.lane.b32.xlu0 %v3902_v29, %s3585_s13  ;;  %3017 = vrot.lane.b32.xlu1 %v3896_v26, %s3585_s13  ;;  %s3519_s13 = scalar_lea.vmem %s3518_s12, 768 }
 0x1b2   : > { %p3521_p1 = scmp.lt.s32.totalorder %s3519_s13, %s3513_s10 }
 0x1b4   : > { %p3522_p2 = por %p3521_p1, %p3520_p0 }
 0x1b5   : > { %3183 = vperm.xlu0 %3511, %v3180_v31   ;;  %3174 = vperm.xlu1 %3512, %v3171_v32  }
 0x1b6   : > { %p3523_p3 = pnand %p3522_p2, %p3516_p13 }
 0x1f7   : > { %v1770_v33 = vpop.permute.xlu0 %1769  ;;  %v1780_v34 = vpop.permute.xlu1 %1779 }
 0x1fb   : > { %v2079_v35 = vpop.permute.xlu1 %2078  ;;  %v1766_v36 = vpop.permute.xlu0 %1765 }
 0x1fc   : > { %v1773_v50 = vsel %vm315_vm3, %v1770_v33, %v1766_v36 }
 0x1ff   : > { %v1778_v37 = vpop.permute.xlu0 %1777  ;;  %v1776_v38 = vpop.permute.xlu1 %1775 }
 0x200   : > { %v1781_v40 = vsel %vm326_vm1, %v1778_v37, %v1780_v34  ;;  %v1783_v41 = vsel %vm326_vm1, %v1780_v34, %v1776_v38  ;;  %v1782_v42 = vsel %vm326_vm1, %v1776_v38, %v1778_v37 }
 0x201   : > { %1819 = vmatprep.subr.mxu0 %v1782_v42  ;;  %3414 = vmatpush3.msra.mxu1 %v1781_v40 }
 0x202   : > { %1820 = vmatpush1.msra.mxu0 %v1783_v41  ;;  %3416 = vmatmul.mubr.msk.f32.vlgmr.msra.gmra.mxu1 %vm332_vm2, %v3303_v39 }
 0x203   : > { %v2233_v43 = vpop.permute.xlu0 %2232  ;;  %v2075_v44 = vpop.permute.xlu1 %2074  ;;  %3304 = vmatmul.mubr.msk.f32.vlgmr.msra.gmra.mxu0 %vm332_vm2, %v3303_v39  ;;  %3418 = vmatprep.subr.mxu1 %v3575_v0 }
 0x204   : > { %3420 = vmatprep.mubr.msk.f32.mxu1 %vm3576_vm0, %v3575_v0  ;;  %1997 = vmatprep.mubr.f32.mxu0 %v3575_v0  ;;  %v2082_v56 = vsel %vm627_vm4, %v2079_v35, %v2075_v44 }
 0x207   : > { %v2077_v45 = vpop.permute.xlu0 %2076  ;;  %v1768_v46 = vpop.permute.xlu1 %1767 }
 0x208   : > { %v1771_v48 = vsel %vm315_vm3, %v1768_v46, %v1770_v33  ;;  %v1772_v49 = vsel %vm315_vm3, %v1766_v36, %v1768_v46  ;;  %v2080_v51 = vsel %vm627_vm4, %v2077_v45, %v2079_v35  ;;  %v2081_v53 = vsel %vm627_vm4, %v2075_v44, %v2077_v45 }
 0x209   : > { %1963 = vmatprep.subr.mxu0 %v1772_v49  ;;  %3419 = vmatpush3.msra.mxu1 %v1771_v48 }
 0x20a   : > { %1964 = vmatpush1.msra.mxu0 %v1773_v50  ;;  %3421 = vmatmul.mubr.msk.f32.vlgmr.msra.gmra.mxu1 %vm332_vm2, %v1774_v47 }
 0x20b   : > { %3423 = vmatprep.subr.mxu1 %v3575_v0  ;;  %v2237_v52 = vpop.permute.xlu0 %2236  ;;  %3306 = vmatmul.mubr.msk.f32.vlgmr.msra.gmra.mxu0 %vm332_vm2, %v1774_v47  ;;  %v2540_v54 = vpop.permute.xlu1 %2539 }
 0x20c   : > { %2118 = vmatprep.subr.mxu0 %v2081_v53  ;;  %3424 = vmatpush3.msra.mxu1 %v2080_v51  ;;  %v2240_v62 = vsel %vm786_vm5, %v2237_v52, %v2233_v43 }
 0x20d   : > { %2119 = vmatpush1.msra.mxu0 %v2082_v56  ;;  %3425 = vmatprep.mubr.msk.f32.mxu1 %vm3576_vm0, %v3575_v0 }
 0x20e   : > { %2152 = vmatprep.mubr.f32.mxu0 %v3575_v0  ;;  %3426 = vmatmul.mubr.msk.f32.vlgmr.msra.gmra.mxu1 %vm332_vm2, %v3308_v55 }
 0x20f   : > { %v2544_v57 = vpop.permute.xlu0 %2543  ;;  %3309 = vmatmul.mubr.msk.f32.vlgmr.msra.gmra.mxu0 %vm332_vm2, %v3308_v55  ;;  %v2235_v58 = vpop.permute.xlu1 %2234  ;;  %3428 = vmatprep.subr.mxu1 %v3575_v0 }
 0x210   : > { %v2238_v60 = vsel %vm786_vm5, %v2235_v58, %v2237_v52  ;;  %v2239_v61 = vsel %vm786_vm5, %v2233_v43, %v2235_v58  ;;  %3430 = vmatprep.mubr.msk.f32.mxu1 %vm3576_vm0, %v3575_v0  ;;  %2310 = vmatprep.mubr.f32.mxu0 %v3575_v0  ;;  %v2547_v6 = vsel %vm1094_vm6, %v2544_v57, %v2540_v54 }
 0x211   : > { %2276 = vmatprep.subr.mxu0 %v2239_v61  ;;  %3429 = vmatpush3.msra.mxu1 %v2238_v60 }
 0x212   : > { %2277 = vmatpush1.msra.mxu0 %v2240_v62  ;;  %3431 = vmatmul.mubr.msk.f32.vlgmr.msra.gmra.mxu1 %vm332_vm2, %v3311_v59 }
 0x213   : > { %3433 = vmatprep.subr.mxu1 %v3575_v0  ;;  %v2698_v63 = vpop.permute.xlu0 %2697  ;;  %3312 = vmatmul.mubr.msk.f32.vlgmr.msra.gmra.mxu0 %vm332_vm2, %v3311_v59  ;;  %v2702_v4 = vpop.permute.xlu1 %2701 }
 0x214   : > { %2425 = vmatprep.subr.mxu0 %v3908_v30  ;;  %3434 = vmatpush3.msra.mxu1 %v3896_v26  ;;  %v2705_v13 = vsel %vm1253_vm7, %v2702_v4, %v2698_v63  ;;  %v3326_v30 = vld [vmem:[%s4127_s2 + $0x40] sm:$0xff] }
 0x215   : > { %2426 = vmatpush1.msra.mxu0 %v3902_v29  ;;  %3435 = vmatprep.mubr.msk.f32.mxu1 %vm3576_vm0, %v3575_v0 }
 0x216   : > { %3438 = vmatprep.subr.mxu1 %v3575_v0  ;;  %2459 = vmatprep.mubr.f32.mxu0 %v3575_v0 }
 0x217   : > { %3436 = vmatmul.mubr.msk.f32.vlgmr.msra.gmra.mxu1 %vm332_vm2, %v3314_v5  ;;  %v2700_v9 = vpop.permute.xlu0 %2699  ;;  %3315 = vmatmul.mubr.msk.f32.vlgmr.msra.gmra.mxu0 %vm332_vm2, %v3314_v5  ;;  %v2542_v10 = vpop.permute.xlu1 %2541 }
 0x218   : > { %3439 = vmatpush3.msra.mxu1 %v2547_v6  ;;  %v2546_v11 = vsel %vm1094_vm6, %v2540_v54, %v2542_v10  ;;  %v2545_v7 = vsel %vm1094_vm6, %v2542_v10, %v2544_v57  ;;  %3440 = vmatprep.mubr.msk.f32.mxu1 %vm3576_vm0, %v3575_v0  ;;  %v2703_v15 = vsel %vm1253_vm7, %v2700_v9, %v2702_v4 }
 0x219   : > { %2583 = vmatprep.subr.mxu0 %v2545_v7  ;;  %3443 = vmatprep.subr.mxu1 %v3575_v0  ;;  %v2704_v17 = vsel %vm1253_vm7, %v2698_v63, %v2700_v9 }
 0x21a   : > { %2584 = vmatpush1.msra.mxu0 %v2546_v11  ;;  %2617 = vmatprep.mubr.f32.mxu0 %v3575_v0 }
 0x21b   : > { %3441 = vmatmul.mubr.msk.f32.vlgmr.msra.gmra.mxu1 %vm332_vm2, %v3317_v12  ;;  %v2860_v14 = vpop.permute.xlu0 %2859  ;;  %3318 = vmatmul.mubr.msk.f32.vlgmr.msra.gmra.mxu0 %vm332_vm2, %v3317_v12  ;;  %v2856_v16 = vpop.permute.xlu1 %2855 }
 0x21c   : > { %3444 = vmatpush3.msra.mxu1 %v2705_v13  ;;  %2741 = vmatprep.subr.mxu0 %v2703_v15  ;;  %v2863_v19 = vsel %vm1412_vm8, %v2860_v14, %v2856_v16 }
 0x21d   : > { %2742 = vmatpush1.msra.mxu0 %v2704_v17  ;;  %3445 = vmatprep.mubr.msk.f32.mxu1 %vm3576_vm0, %v3575_v0 }
 0x21e   : > { %3448 = vmatprep.subr.mxu1 %v3575_v0  ;;  %2775 = vmatprep.mubr.f32.mxu0 %v3575_v0 }
 0x21f   : > { %3446 = vmatmul.mubr.msk.f32.vlgmr.msra.gmra.mxu1 %vm332_vm2, %v3320_v18  ;;  %v3016_v20 = vpop.permute.xlu0 %3015  ;;  %3321 = vmatmul.mubr.msk.f32.vlgmr.msra.gmra.mxu0 %vm332_vm2, %v3320_v18  ;;  %v2858_v21 = vpop.permute.xlu1 %2857 }
 0x220   : > { %3449 = vmatpush3.msra.mxu1 %v2863_v19  ;;  %v2862_v22 = vsel %vm1412_vm8, %v2856_v16, %v2858_v21  ;;  %v2861_v23 = vsel %vm1412_vm8, %v2858_v21, %v2860_v14  ;;  %3450 = vmatprep.mubr.msk.f32.mxu1 %vm3576_vm0, %v3575_v0 }
 0x221   : > { %2899 = vmatprep.subr.mxu0 %v2861_v23  ;;  %2933 = vmatprep.mubr.f32.mxu0 %v3575_v0 }
 0x222   : > { %2900 = vmatpush1.msra.mxu0 %v2862_v22  ;;  %3453 = vmatprep.subr.mxu1 %v3575_v0 }
 0x223   : > { %3451 = vmatmul.mubr.msk.f32.vlgmr.msra.gmra.mxu1 %vm332_vm2, %v3323_v24  ;;  %v3014_v25 = vpop.permute.xlu0 %3013  ;;  %3324 = vmatmul.mubr.msk.f32.vlgmr.msra.gmra.mxu0 %vm332_vm2, %v3323_v24  ;;  %v3018_v26 = vpop.permute.xlu1 %3017 }
 0x224   : > { %v3020_v27 = vsel %vm1571_vm9, %v3014_v25, %v3016_v20  ;;  %v3021_v28 = vsel %vm1571_vm9, %v3018_v26, %v3014_v25  ;;  %v3019_v29 = vsel %vm1571_vm9, %v3016_v20, %v3018_v26  ;;  %3455 = vmatprep.mubr.msk.f32.mxu1 %vm3576_vm0, %v3575_v0  ;;  %3091 = vmatprep.mubr.f32.mxu0 %v3575_v0 }
 0x225   : > { %3057 = vmatprep.subr.mxu0 %v3019_v29  ;;  %3454 = vmatpush3.msra.mxu1 %v3021_v28 }
 0x226   : > { %3058 = vmatpush1.msra.mxu0 %v3020_v27 }
 0x227   : > { %3456 = vmatmul.mubr.msk.f32.vlgmr.msra.gmra.mxu1 %vm332_vm2, %v3326_v30  ;;  %3327 = vmatmul.mubr.msk.f32.vlgmr.msra.gmra.mxu0 %vm332_vm2, %v3326_v30 }
 0x230   : > { %v3175_v24 = vpop.permute.xlu1 %3174 }
 0x2c2   : > { %v1926_v31 = vpop.f32.mrf.mxu1 }
 0x2c3   : > { %v1855_v8 = vpop.f32.mrf.mxu0 }
 0x2c4   : > { %v3417_v32 = vpop.f32.mrf.mxu1 }
 0x2c5   : > { %v1857_v33 = vpop.f32.mrf.mxu0 }
 0x2ca   : > { %v2070_v34 = vpop.f32.mrf.mxu1 }
 0x2cb   : > { %v1999_v35 = vpop.f32.mrf.mxu0  ;;  %v2071_v49 = vadd.f32 %v2070_v34, %v1926_v31 }
 0x2cc   : > { %v3422_v36 = vpop.f32.mrf.mxu1  ;;  %v2000_v50 = vadd.f32 %v1999_v35, %v1855_v8  ;;  %v3184_v8 = vpop.permute.xlu0 %3183 }
 0x2cd   : > { %v2001_v37 = vpop.f32.mrf.mxu0 }
 0x2ce   : > { %v2225_v0 = vpop.f32.mrf.mxu1  ;;  %v2002_v53 = vadd.f32 %v2001_v37, %v1857_v33 }
 0x2cf   : > { %v2154_v38 = vpop.f32.mrf.mxu0  ;;  %v2231_v54 = vadd.f32 %v2225_v0, %v2071_v49 }
 0x2d0   : > { %v3427_v39 = vpop.f32.mrf.mxu1  ;;  %v2229_v55 = vadd.f32 %v2154_v38, %v2000_v50 }
 0x2d1   : > { %v2156_v40 = vpop.f32.mrf.mxu0 }
 0x2d2   : > { %v2383_v41 = vpop.f32.mrf.mxu1  ;;  %v2230_v58 = vadd.f32 %v2156_v40, %v2002_v53 }
 0x2d3   : > { %v2312_v42 = vpop.f32.mrf.mxu0  ;;  %v2389_v59 = vadd.f32 %v2383_v41, %v2231_v54 }
 0x2d4   : > { %v3432_v43 = vpop.f32.mrf.mxu1  ;;  %v2387_v60 = vadd.f32 %v2312_v42, %v2229_v55 }
 0x2d5   : > { %v2314_v44 = vpop.f32.mrf.mxu0 }
 0x2d6   : > { %v2388_v63 = vadd.f32 %v2314_v44, %v2230_v58 }
 0x2d7   : > { %v2532_v45 = vpop.f32.mrf.mxu1  ;;  %v2461_v46 = vpop.f32.mrf.mxu0 }
 0x2d8   : > { %v2538_v4 = vadd.f32 %v2532_v45, %v2389_v59  ;;  %v2536_v5 = vadd.f32 %v2461_v46, %v2387_v60 }
 0x2d9   : > { %v3437_v47 = vpop.f32.mrf.mxu1  ;;  %v2463_v48 = vpop.f32.mrf.mxu0 }
 0x2da   : > { %v2537_v10 = vadd.f32 %v2463_v48, %v2388_v63 }
 0x2db   : > { %v2690_v51 = vpop.f32.mrf.mxu1  ;;  %v2619_v52 = vpop.f32.mrf.mxu0 }
 0x2dc   : > { %v2696_v11 = vadd.f32 %v2690_v51, %v2538_v4  ;;  %v2694_v7 = vadd.f32 %v2619_v52, %v2536_v5 }
 0x2dd   : > { %v3442_v56 = vpop.f32.mrf.mxu1  ;;  %v2621_v57 = vpop.f32.mrf.mxu0 }
 0x2de   : > { %v2695_v14 = vadd.f32 %v2621_v57, %v2537_v10 }
 0x2df   : > { %v2848_v61 = vpop.f32.mrf.mxu1  ;;  %v2777_v62 = vpop.f32.mrf.mxu0 }
 0x2e0   : > { %v2854_v15 = vadd.f32 %v2848_v61, %v2696_v11  ;;  %v2852_v16 = vadd.f32 %v2777_v62, %v2694_v7 }
 0x2e1   : > { %v3447_v6 = vpop.f32.mrf.mxu1  ;;  %v2779_v9 = vpop.f32.mrf.mxu0 }
 0x2e2   : > { %v2853_v19 = vadd.f32 %v2779_v9, %v2695_v14 }
 0x2e3   : > { %v3006_v12 = vpop.f32.mrf.mxu1  ;;  %v2935_v13 = vpop.f32.mrf.mxu0 }
 0x2e4   : > { %v3012_v20 = vadd.f32 %v3006_v12, %v2854_v15  ;;  %v3010_v21 = vadd.f32 %v2935_v13, %v2852_v16 }
 0x2e5   : > { %v3452_v17 = vpop.f32.mrf.mxu1  ;;  %v2937_v18 = vpop.f32.mrf.mxu0 }
 0x2e6   : > { %v3011_v25 = vadd.f32 %v2937_v18, %v2853_v19 }
 0x2e7   : > { %v3164_v22 = vpop.f32.mrf.mxu1  ;;  %v3093_v23 = vpop.f32.mrf.mxu0 }
 0x2e8   : > { %v3170_v26 = vadd.f32 %v3164_v22, %v3012_v20  ;;  %v3168_v27 = vadd.f32 %v3093_v23, %v3010_v21 }
 0x2e9   : > { %v3095_v28 = vpop.f32.mrf.mxu0  ;;  %v3457_v29 = vpop.f32.mrf.mxu1 }
 0x2ea   : > { %v3179_v30 = vmul.f32 %v3175_v24, %v3170_v26  ;;  %v3177_v31 = vmul.f32 %v3175_v24, %v3168_v27  ;;  %v3169_v32 = vadd.f32 %v3095_v28, %v3011_v25 }
 0x2ec   : > { %v3188_v33 = vadd.f32 %v3184_v8, %v3179_v30  ;;  %v3186_v34 = vadd.f32 %v3184_v8, %v3177_v31  ;;  %v3178_v35 = vmul.f32 %v3175_v24, %v3169_v32 }
 0x2ee   : > { %v3191_v36 = vsub.f32 %v3188_v33, %v3689_v1  ;;  %v3189_v37 = vsub.f32 %v3186_v34, %v3691_v2  ;;  %v3187_v0 = vadd.f32 %v3184_v8, %v3178_v35 }
 0x2f0   : > { %v3194_v38 = vmax.f32 %v3191_v36, 0.0  ;;  %v3192_v39 = vmax.f32 %v3189_v37, 0.0  ;;  %v3190_v40 = vsub.f32 %v3187_v0, %v3697_v3 }
 0x2f2   : > { %v3193_v41 = vmax.f32 %v3190_v40, 0.0  ;;  %3195 = vst [vmem:[%s298_s20] sm:$0xff] %v3192_v39  ;;  %3197 = vst [vmem:[%s298_s20 + $0x10] sm:$0xff] %v3194_v38 }
 0x2f4   : > { %3196 = vst [vmem:[%s298_s20 + $0x8] sm:$0xff] %v3193_v41 }
 0x2f5   : > { %3526 = shalt.err (!%p3523_p3)
}
 0x2f6   : > { %s3527_s21 = scalar_lea.hbm %s3211_s25, 384  ;;  %s3531_s19 = scalar_lea.hbm %s4133_s8, 768 }
 0x2f7   : > { %p3528_p4 = scmp.ne.s32.totalorder %s3211_s25, %s3527_s21  ;;  %p3532_p9 = scmp.lt.s32.totalorder %s3211_s25, %s4133_s8 }
 0x2f8   : > { %p3533_p10 = scmp.lt.s32.totalorder %s3531_s19, %s3527_s21 }
 0x2f9   : > { %p3529_p7 = pnand %p3528_p4, %p3670_p5 }
 0x2fa   : > { %p3534_p11 = por %p3533_p10, %p3532_p9 }
 0x2fb   : > { %p3530_p8 = pneg %p3529_p7 }
 0x2fd   : > { %p3535_p12 = pnand %p3534_p11, %p3530_p8 }
 0x2ff   : > { %3538 = shalt.err (!%p3535_p12)
}
 0x300   : > { %3461 = dma.vmem_to_hbm [thread:$0]  (%p3670_p5), %s3214_s22, 384, %s3211_s25, %s3199_s26  }
 0x301 PF: > { %p3467_p13 = scmp.ge.s32.totalorder %s3573_s30, 2  ;;  %s3225_s24 = sand.u32 1, %s3561_s27  }
 0x302   : > { %s3226_s10 = scalar_lea.sflag [#allocation3], %s3225_s24 }
 0x303   : > { %p3464_p0 = pnand %p3467_p13, %p3674_p6 }
 0x305   : > { %p3465_p1 = pneg %p3464_p0 }
 0x307   : > { %3556 = dma.done.wait (%p3465_p1), %s3226_s10, 384  }
 0x308   : > { %3558 = vsyncadd (%p3465_p1), %s3226_s10, 4294966912  ;;  %p18_p2 = scmp.ge.s32.totalorder %s3657_s11, 4   ;;  %s4136_s27 = smov %s3565_s28 }
 0x309   : > { %s4137_s28 = smov %s3569_s29  ;;  %s4138_s29 = smov %s3668_s14 }
 0x30a   : > { %s4139_s30 = smov %s3657_s11  ;;  %20 = sbr.rel (!%p18_p2) target bundleno = 3 (0x3), region = 103 }
 0x30f   :  { %3231 = vsyncpa [#allocation3], 1 }
 0x310   :  { %3233 = vsyncpa [#allocation3 + $0x1], 1 }

</bundles_post_ra>
